<compile_context>
chip_gen: v7x
topology: tpu7x:2x2x1
jax: 0.10.0
libtpu: 0.0.40
codegen_flags: <defaults>
</compile_context>

<pallas_src>
import functools

import jax
import jax.numpy as jnp
import numpy as np
from jax.experimental import pallas as pl
from jax.experimental.pallas import tpu as pltpu


def _decoder_kernel(x_ref, w1t_ref, w2t_ref, vecs_ref, w3cat_ref, dw1_ref, dw2cat_ref,
                    o_ref, *, tb, num_objects, hidden, p_pad):
    f32 = jnp.float32
    vecs = vecs_ref[...]                      # (8, hidden): b1, b2, ln_g, ln_b, db1, 0, 0, 0
    b1 = vecs[0:1, :]
    b2 = vecs[1:2, :]
    gamma = vecs[2:3, :]
    beta = vecs[3:4, :]
    db1 = vecs[4:5, :]

    # --- MLP: rows = (tile_batch * num_objects), features on the lane axis ----
    h = jnp.dot(x_ref[...], w1t_ref[...], preferred_element_type=f32) + b1
    h = jnp.maximum(h, 0.0)                                             # act1

    h = jnp.dot(h, w2t_ref[...], preferred_element_type=f32) + b2       # fc2
    mu = jnp.mean(h, axis=-1, keepdims=True)                            # LayerNorm (centered)
    hc = h - mu
    var = jnp.mean(hc * hc, axis=-1, keepdims=True)
    h = hc * jax.lax.rsqrt(var + 1e-5)
    h = jnp.maximum(h * gamma + beta, 0.0)                              # act2

    w3cat = w3cat_ref[...]                                              # (hidden+1, Ppad)
    h3 = (jnp.dot(h, w3cat[:hidden, :], preferred_element_type=f32)
          + w3cat[hidden:hidden + 1, :])                                # (TB*K, Ppad)

    # --- deconv1 (1x1): ONE whole-tile transpose, then lane-slice matmuls -----
    h3t = h3.T                                                          # (Ppad, TB*K)
    dw1 = dw1_ref[...]                                                  # (K, hidden)
    mids = [
        jnp.dot(h3t[:, b * num_objects:(b + 1) * num_objects], dw1,
                preferred_element_type=f32)                             # (Ppad, hidden)
        for b in range(tb)
    ]
    mid = mids[0] if tb == 1 else jnp.concatenate(mids, axis=0)         # (TB*Ppad, hidden)
    mid = jnp.maximum(mid + db1, 0.0)                                   # act3

    # --- deconv2 (10x10, stride 10): one big lane-dense matmul + one store ----
    dw2cat = dw2cat_ref[...]                                            # (hidden+1, Qpad)
    o_ref[...] = (jnp.dot(mid, dw2cat[:hidden, :], preferred_element_type=f32)
                  + dw2cat[hidden:hidden + 1, :])                       # (TB*Ppad, Qpad)


def _round_up(x, m):
    return ((x + m - 1) // m) * m


def _pick_block_batch(batch, num_objects, cap=8):
    for tb in range(min(batch, cap), 0, -1):
        if batch % tb == 0 and (tb * num_objects) % 8 == 0:
            return tb
    return batch


def prepare_params(params, num_objects, map_size):
    """One-time parameter fusion / padding (hoisted out of the per-step path)."""
    cout, wm, hm = map_size
    p = wm * hm
    q = cout * 100
    hidden = params["w1"].shape[0]
    p_pad = max(_round_up(p, 8), 8)          # sublane-aligned spatial dim
    q_pad = max(_round_up(q, 128), 128)      # lane-dense output dim
    f32 = jnp.float32

    w1t = params["w1"].T.astype(f32)                                   # (input_dim, hidden)
    w2t = params["w2"].T.astype(f32)                                   # (hidden, hidden)

    vecs = jnp.zeros((8, hidden), f32)                                  # b1,b2,ln_g,ln_b,db1,pad
    vecs = (vecs.at[0].set(params["b1"]).at[1].set(params["b2"])
                .at[2].set(params["ln_g"]).at[3].set(params["ln_b"])
                .at[4].set(params["db1"]))

    w3cat = jnp.zeros((hidden + 1, p_pad), f32)                         # fc3 weight.T | bias row
    w3cat = w3cat.at[:hidden, :p].set(params["w3"].T.astype(f32))
    w3cat = w3cat.at[hidden, :p].set(params["b3"].astype(f32))

    dw1 = params["dw1"][:, :, 0, 0].astype(f32)                         # (K, hidden)

    dw2cat = jnp.zeros((hidden + 1, q_pad), f32)                        # flat deconv2 | bias row
    dw2cat = dw2cat.at[:hidden, :q].set(params["dw2"].reshape(hidden, q).astype(f32))
    dw2cat = dw2cat.at[hidden, :q].set(jnp.repeat(params["db2"].astype(f32), 100))

    return dict(w1t=w1t, w2t=w2t, vecs=vecs, w3cat=w3cat, dw1=dw1, dw2cat=dw2cat)


@functools.partial(jax.jit, static_argnames=("num_objects", "map_size", "block_batch"))
def decoder_cnn_small_forward(ins, prep, num_objects, map_size, block_batch=None):
    """ins: (B, num_objects, input_dim) f32. Returns (B, Cout, 10*Wm, 10*Hm)."""
    cout, wm, hm = map_size
    p = wm * hm
    q = cout * 100
    batch, k, input_dim = ins.shape
    assert k == num_objects
    hidden = prep["w1t"].shape[1]
    p_pad = prep["w3cat"].shape[1]
    q_pad = prep["dw2cat"].shape[1]

    tb = block_batch if block_batch is not None else _pick_block_batch(batch, k)
    assert batch % tb == 0, "batch tile must divide batch"
    assert (tb * k) % 8 == 0 or tb == batch, "batch tile would be sublane-misaligned"

    x2d = ins.reshape(batch * k, input_dim).astype(jnp.float32)
    grid = (batch // tb,)

    kernel = functools.partial(_decoder_kernel, tb=tb, num_objects=k,
                               hidden=hidden, p_pad=p_pad)

    flops = (2 * batch * k * hidden * (input_dim + hidden + p_pad)      # fc1 + fc2 + fc3
             + 2 * batch * p_pad * hidden * (k + q_pad))                # deconv1 + deconv2
    weight_bytes = sum(int(np.prod(v.shape)) * 4 for v in prep.values())
    bytes_accessed = int(x2d.size * 4 + weight_bytes + batch * p_pad * q_pad * 4)

    out = pl.pallas_call(
        kernel,
        out_shape=jax.ShapeDtypeStruct((batch * p_pad, q_pad), jnp.float32),
        grid=grid,
        in_specs=[
            pl.BlockSpec((tb * k, input_dim), lambda i: (i, 0)),        # per-tile activations
            pl.BlockSpec(prep["w1t"].shape, lambda i: (0, 0)),          # weights: VMEM-resident
            pl.BlockSpec(prep["w2t"].shape, lambda i: (0, 0)),
            pl.BlockSpec(prep["vecs"].shape, lambda i: (0, 0)),
            pl.BlockSpec(prep["w3cat"].shape, lambda i: (0, 0)),
            pl.BlockSpec(prep["dw1"].shape, lambda i: (0, 0)),
            pl.BlockSpec(prep["dw2cat"].shape, lambda i: (0, 0)),
        ],
        out_specs=pl.BlockSpec((tb * p_pad, q_pad), lambda i: (i, 0)),
        compiler_params=pltpu.CompilerParams(
            dimension_semantics=("parallel",)),                          # dual-TC split on v7x
        cost_estimate=pl.CostEstimate(
            flops=int(flops), transcendentals=int(batch * k),
            bytes_accessed=bytes_accessed),
    )(x2d, prep["w1t"], prep["w2t"], prep["vecs"], prep["w3cat"],
      prep["dw1"], prep["dw2cat"])

    # Wrapper glue: strip padding, assemble NCHW from per-pixel 10x10 blocks.
    # out[b, x*Hm+y, c*100 + i*10 + j] -> img[b, c, x*10+i, y*10+j]
    out = out.reshape(batch, p_pad, q_pad)[:, :p, :q]
    out = out.reshape(batch, wm, hm, cout, 10, 10)
    out = jnp.transpose(out, (0, 3, 1, 4, 2, 5))                        # (B,Cout,Wm,10,Hm,10)
    return out.reshape(batch, cout, wm * 10, hm * 10)


def reference_forward(ins, params, num_objects, map_size):
    """Pure-JAX reference matching the PyTorch forward semantics."""
    cout, wm, hm = map_size
    batch = ins.shape[0]
    h = jnp.maximum(ins @ params["w1"].T + params["b1"], 0.0)
    h = h @ params["w2"].T + params["b2"]
    mu = h.mean(-1, keepdims=True)
    var = ((h - mu) ** 2).mean(-1, keepdims=True)
    h = (h - mu) / jnp.sqrt(var + 1e-5) * params["ln_g"] + params["ln_b"]
    h = jnp.maximum(h, 0.0)
    h = h @ params["w3"].T + params["b3"]                                  # (B, K, P)
    hc = h.reshape(batch, num_objects, wm, hm)
    dw1 = params["dw1"][:, :, 0, 0]                                        # (K, hidden)
    mid = jnp.einsum("bkxy,kc->bcxy", hc, dw1) + params["db1"][None, :, None, None]
    mid = jnp.maximum(mid, 0.0)
    blk = (jnp.einsum("bcxy,coij->boxiyj", mid, params["dw2"])
           + params["db2"][None, :, None, None, None, None])
    return blk.reshape(batch, cout, wm * 10, hm * 10)


def init_params(key, input_dim, hidden_dim, num_objects, map_size):
    cout, wm, hm = map_size
    p = wm * hm
    ks = jax.random.split(key, 12)
    s = 0.1
    return dict(
        w1=s * jax.random.normal(ks[0], (hidden_dim, input_dim), jnp.float32),
        b1=s * jax.random.normal(ks[1], (hidden_dim,), jnp.float32),
        w2=s * jax.random.normal(ks[2], (hidden_dim, hidden_dim), jnp.float32),
        b2=s * jax.random.normal(ks[3], (hidden_dim,), jnp.float32),
        w3=s * jax.random.normal(ks[4], (p, hidden_dim), jnp.float32),
        b3=s * jax.random.normal(ks[5], (p,), jnp.float32),
        ln_g=jnp.ones((hidden_dim,), jnp.float32),
        ln_b=jnp.zeros((hidden_dim,), jnp.float32),
        dw1=s * jax.random.normal(ks[6], (num_objects, hidden_dim, 1, 1), jnp.float32),
        db1=s * jax.random.normal(ks[7], (hidden_dim,), jnp.float32),
        dw2=s * jax.random.normal(ks[8], (hidden_dim, cout, 10, 10), jnp.float32),
        db2=s * jax.random.normal(ks[9], (cout,), jnp.float32),
    )


if __name__ == "__main__":
    key = jax.random.PRNGKey(0)
    kx, kp = jax.random.split(key)

    input_dim, hidden_dim, num_objects = 8, 32, 4
    output_size = (3, 50, 50)
    map_size = (output_size[0], output_size[1] // 10, output_size[2] // 10)  # (3, 5, 5)
    batch = 4                      # small, but exercises a 2-step batch grid with tb=2

    ins = jax.random.normal(kx, (batch, num_objects, input_dim), jnp.float32)
    params = init_params(kp, input_dim, hidden_dim, num_objects, map_size)

    prep = prepare_params(params, num_objects, map_size)   # one-time fused/padded weights
    out = decoder_cnn_small_forward(ins, prep, num_objects=num_objects,
                                    map_size=map_size, block_batch=2)
    out = jax.block_until_ready(out)

    assert out.shape == (batch, output_size[0], output_size[1], output_size[2]), out.shape
    ref = reference_forward(ins, params, num_objects, map_size)
    np.testing.assert_allclose(np.asarray(out), np.asarray(ref), rtol=1e-4, atol=1e-4)

    print("KERNEL_OK")
</pallas_src>

<mosaic_0001>
module attributes {stable_mosaic.version = 11 : i64} {
  func.func @_decoder_kernel(%arg0: i32, %arg1: memref<8x8xf32, #tpu.memory_space<vmem>>, %arg2: memref<8x32xf32, #tpu.memory_space<vmem>>, %arg3: memref<32x32xf32, #tpu.memory_space<vmem>>, %arg4: memref<8x32xf32, #tpu.memory_space<vmem>>, %arg5: memref<33x32xf32, #tpu.memory_space<vmem>>, %arg6: memref<4x32xf32, #tpu.memory_space<vmem>>, %arg7: memref<33x384xf32, #tpu.memory_space<vmem>>, %arg8: memref<64x384xf32, #tpu.memory_space<vmem>>) attributes {dimension_semantics = [#tpu.dimension_semantics<parallel>], iteration_bounds = array<i64: 2>, scalar_prefetch = 0 : i64, scratch_operands = 0 : i64, tpu.core_type = #tpu.core_type<tc>, window_params = [{transform_indices = @transform_0, window_bounds = array<i64: 8, 8>}, {pipeline_mode = #tpu.pipeline_mode<synchronous>, transform_indices = @transform_1, window_bounds = array<i64: 8, 32>}, {pipeline_mode = #tpu.pipeline_mode<synchronous>, transform_indices = @transform_2, window_bounds = array<i64: 32, 32>}, {pipeline_mode = #tpu.pipeline_mode<synchronous>, transform_indices = @transform_3, window_bounds = array<i64: 8, 32>}, {pipeline_mode = #tpu.pipeline_mode<synchronous>, transform_indices = @transform_4, window_bounds = array<i64: 33, 32>}, {pipeline_mode = #tpu.pipeline_mode<synchronous>, transform_indices = @transform_5, window_bounds = array<i64: 4, 32>}, {pipeline_mode = #tpu.pipeline_mode<synchronous>, transform_indices = @transform_6, window_bounds = array<i64: 33, 384>}, {transform_indices = @transform_7, window_bounds = array<i64: 64, 384>}]} {
    %c0 = arith.constant 0 : index
    %c0_0 = arith.constant 0 : index
    %0 = vector.load %arg4[%c0, %c0_0] : memref<8x32xf32, #tpu.memory_space<vmem>>, vector<8x32xf32>
    %1 = vector.extract_strided_slice %0 {offsets = [0, 0], sizes = [1, 32], strides = [1, 1]} : vector<8x32xf32> to vector<1x32xf32>
    %2 = vector.extract_strided_slice %0 {offsets = [1, 0], sizes = [1, 32], strides = [1, 1]} : vector<8x32xf32> to vector<1x32xf32>
    %3 = vector.extract_strided_slice %0 {offsets = [2, 0], sizes = [1, 32], strides = [1, 1]} : vector<8x32xf32> to vector<1x32xf32>
    %4 = vector.extract_strided_slice %0 {offsets = [3, 0], sizes = [1, 32], strides = [1, 1]} : vector<8x32xf32> to vector<1x32xf32>
    %5 = vector.extract_strided_slice %0 {offsets = [4, 0], sizes = [1, 32], strides = [1, 1]} : vector<8x32xf32> to vector<1x32xf32>
    %c0_1 = arith.constant 0 : index
    %c0_2 = arith.constant 0 : index
    %6 = vector.load %arg1[%c0_1, %c0_2] : memref<8x8xf32, #tpu.memory_space<vmem>>, vector<8x8xf32>
    %c0_3 = arith.constant 0 : index
    %c0_4 = arith.constant 0 : index
    %7 = vector.load %arg2[%c0_3, %c0_4] : memref<8x32xf32, #tpu.memory_space<vmem>>, vector<8x32xf32>
    %cst = arith.constant dense<0.000000e+00> : vector<8x32xf32>
    %8 = tpu.matmul %6, %7, %cst {dimension_numbers = #tpu.dot_dimension_numbers<[1], [0], [0], [1], [0, 0, 1, 1], [], []>} : vector<8x8xf32>, vector<8x32xf32>, vector<8x32xf32> -> vector<8x32xf32>
    %9 = vector.broadcast %1 : vector<1x32xf32> to vector<8x32xf32>
    %10 = arith.addf %8, %9 : vector<8x32xf32>
    %cst_5 = arith.constant 0.000000e+00 : f32
    %11 = vector.broadcast %cst_5 : f32 to vector<8x32xf32>
    %12 = arith.maximumf %10, %11 : vector<8x32xf32>
    %c0_6 = arith.constant 0 : index
    %c0_7 = arith.constant 0 : index
    %13 = vector.load %arg3[%c0_6, %c0_7] : memref<32x32xf32, #tpu.memory_space<vmem>>, vector<32x32xf32>
    %cst_8 = arith.constant dense<0.000000e+00> : vector<8x32xf32>
    %14 = tpu.matmul %12, %13, %cst_8 {dimension_numbers = #tpu.dot_dimension_numbers<[1], [0], [0], [1], [0, 0, 1, 1], [], []>} : vector<8x32xf32>, vector<32x32xf32>, vector<8x32xf32> -> vector<8x32xf32>
    %15 = vector.broadcast %2 : vector<1x32xf32> to vector<8x32xf32>
    %16 = arith.addf %14, %15 : vector<8x32xf32>
    %cst_9 = arith.constant dense<0.000000e+00> : vector<8xf32>
    %17 = vector.multi_reduction <add>, %16, %cst_9 [1] : vector<8x32xf32> to vector<8xf32>
    %18 = vector.shape_cast %17 : vector<8xf32> to vector<8x1xf32>
    %cst_10 = arith.constant 3.200000e+01 : f32
    %19 = vector.broadcast %cst_10 : f32 to vector<8x1xf32>
    %20 = arith.divf %18, %19 : vector<8x1xf32>
    %21 = vector.broadcast %20 : vector<8x1xf32> to vector<8x32xf32>
    %22 = arith.subf %16, %21 : vector<8x32xf32>
    %23 = arith.mulf %22, %22 : vector<8x32xf32>
    %cst_11 = arith.constant dense<0.000000e+00> : vector<8xf32>
    %24 = vector.multi_reduction <add>, %23, %cst_11 [1] : vector<8x32xf32> to vector<8xf32>
    %25 = vector.shape_cast %24 : vector<8xf32> to vector<8x1xf32>
    %cst_12 = arith.constant 3.200000e+01 : f32
    %26 = vector.broadcast %cst_12 : f32 to vector<8x1xf32>
    %27 = arith.divf %25, %26 : vector<8x1xf32>
    %cst_13 = arith.constant 9.99999974E-6 : f32
    %28 = vector.broadcast %cst_13 : f32 to vector<8x1xf32>
    %29 = arith.addf %27, %28 : vector<8x1xf32>
    %30 = math.rsqrt %29 : vector<8x1xf32>
    %31 = vector.broadcast %30 : vector<8x1xf32> to vector<8x32xf32>
    %32 = arith.mulf %22, %31 : vector<8x32xf32>
    %33 = vector.broadcast %3 : vector<1x32xf32> to vector<8x32xf32>
    %34 = arith.mulf %32, %33 : vector<8x32xf32>
    %35 = vector.broadcast %4 : vector<1x32xf32> to vector<8x32xf32>
    %36 = arith.addf %34, %35 : vector<8x32xf32>
    %cst_14 = arith.constant 0.000000e+00 : f32
    %37 = vector.broadcast %cst_14 : f32 to vector<8x32xf32>
    %38 = arith.maximumf %36, %37 : vector<8x32xf32>
    %c0_15 = arith.constant 0 : index
    %c0_16 = arith.constant 0 : index
    %39 = vector.load %arg5[%c0_15, %c0_16] : memref<33x32xf32, #tpu.memory_space<vmem>>, vector<33x32xf32>
    %40 = vector.extract_strided_slice %39 {offsets = [0, 0], sizes = [32, 32], strides = [1, 1]} : vector<33x32xf32> to vector<32x32xf32>
    %cst_17 = arith.constant dense<0.000000e+00> : vector<8x32xf32>
    %41 = tpu.matmul %38, %40, %cst_17 {dimension_numbers = #tpu.dot_dimension_numbers<[1], [0], [0], [1], [0, 0, 1, 1], [], []>} : vector<8x32xf32>, vector<32x32xf32>, vector<8x32xf32> -> vector<8x32xf32>
    %42 = vector.extract_strided_slice %39 {offsets = [32, 0], sizes = [1, 32], strides = [1, 1]} : vector<33x32xf32> to vector<1x32xf32>
    %43 = vector.broadcast %42 : vector<1x32xf32> to vector<8x32xf32>
    %44 = arith.addf %41, %43 : vector<8x32xf32>
    %45 = tpu.transpose %44, [1, 0] : vector<8x32xf32> -> vector<32x8xf32>
    %c0_18 = arith.constant 0 : index
    %c0_19 = arith.constant 0 : index
    %46 = vector.load %arg6[%c0_18, %c0_19] : memref<4x32xf32, #tpu.memory_space<vmem>>, vector<4x32xf32>
    %47 = vector.extract_strided_slice %45 {offsets = [0, 0], sizes = [32, 4], strides = [1, 1]} : vector<32x8xf32> to vector<32x4xf32>
    %cst_20 = arith.constant dense<0.000000e+00> : vector<32x32xf32>
    %48 = tpu.matmul %47, %46, %cst_20 {dimension_numbers = #tpu.dot_dimension_numbers<[1], [0], [0], [1], [0, 0, 1, 1], [], []>} : vector<32x4xf32>, vector<4x32xf32>, vector<32x32xf32> -> vector<32x32xf32>
    %49 = vector.extract_strided_slice %45 {offsets = [0, 4], sizes = [32, 4], strides = [1, 1]} : vector<32x8xf32> to vector<32x4xf32>
    %cst_21 = arith.constant dense<0.000000e+00> : vector<32x32xf32>
    %50 = tpu.matmul %49, %46, %cst_21 {dimension_numbers = #tpu.dot_dimension_numbers<[1], [0], [0], [1], [0, 0, 1, 1], [], []>} : vector<32x4xf32>, vector<4x32xf32>, vector<32x32xf32> -> vector<32x32xf32>
    %51 = tpu.concatenate %48, %50 in 0 : vector<32x32xf32>, vector<32x32xf32> -> vector<64x32xf32>
    %52 = vector.broadcast %5 : vector<1x32xf32> to vector<64x32xf32>
    %53 = arith.addf %51, %52 : vector<64x32xf32>
    %cst_22 = arith.constant 0.000000e+00 : f32
    %54 = vector.broadcast %cst_22 : f32 to vector<64x32xf32>
    %55 = arith.maximumf %53, %54 : vector<64x32xf32>
    %c0_23 = arith.constant 0 : index
    %c0_24 = arith.constant 0 : index
    %56 = vector.load %arg7[%c0_23, %c0_24] : memref<33x384xf32, #tpu.memory_space<vmem>>, vector<33x384xf32>
    %57 = vector.extract_strided_slice %56 {offsets = [0, 0], sizes = [32, 384], strides = [1, 1]} : vector<33x384xf32> to vector<32x384xf32>
    %cst_25 = arith.constant dense<0.000000e+00> : vector<64x384xf32>
    %58 = tpu.matmul %55, %57, %cst_25 {dimension_numbers = #tpu.dot_dimension_numbers<[1], [0], [0], [1], [0, 0, 1, 1], [], []>} : vector<64x32xf32>, vector<32x384xf32>, vector<64x384xf32> -> vector<64x384xf32>
    %59 = vector.extract_strided_slice %56 {offsets = [32, 0], sizes = [1, 384], strides = [1, 1]} : vector<33x384xf32> to vector<1x384xf32>
    %60 = vector.broadcast %59 : vector<1x384xf32> to vector<64x384xf32>
    %61 = arith.addf %58, %60 : vector<64x384xf32>
    %c0_26 = arith.constant 0 : index
    %c0_27 = arith.constant 0 : index
    %62 = vector.load %arg8[%c0_26, %c0_27] : memref<64x384xf32, #tpu.memory_space<vmem>>, vector<64x384xf32>
    tpu.vector_store %arg8[%c0_26, %c0_27], %61 {strides = array<i32>} : memref<64x384xf32, #tpu.memory_space<vmem>>, vector<64x384xf32>,
    return
  }
  func.func @transform_0(%arg0: i32) -> (i32, i32) {
    %c0_i32 = arith.constant 0 : i32
    %c0_i32_0 = arith.constant 0 : i32
    return %arg0, %c0_i32 : i32, i32
  }
  func.func @transform_1(%arg0: i32) -> (i32, i32) {
    %c0_i32 = arith.constant 0 : i32
    %c0_i32_0 = arith.constant 0 : i32
    %c0_i32_1 = arith.constant 0 : i32
    return %c0_i32, %c0_i32_0 : i32, i32
  }
  func.func @transform_2(%arg0: i32) -> (i32, i32) {
    %c0_i32 = arith.constant 0 : i32
    %c0_i32_0 = arith.constant 0 : i32
    %c0_i32_1 = arith.constant 0 : i32
    return %c0_i32, %c0_i32_0 : i32, i32
  }
  func.func @transform_3(%arg0: i32) -> (i32, i32) {
    %c0_i32 = arith.constant 0 : i32
    %c0_i32_0 = arith.constant 0 : i32
    %c0_i32_1 = arith.constant 0 : i32
    return %c0_i32, %c0_i32_0 : i32, i32
  }
  func.func @transform_4(%arg0: i32) -> (i32, i32) {
    %c0_i32 = arith.constant 0 : i32
    %c0_i32_0 = arith.constant 0 : i32
    %c0_i32_1 = arith.constant 0 : i32
    return %c0_i32, %c0_i32_0 : i32, i32
  }
  func.func @transform_5(%arg0: i32) -> (i32, i32) {
    %c0_i32 = arith.constant 0 : i32
    %c0_i32_0 = arith.constant 0 : i32
    %c0_i32_1 = arith.constant 0 : i32
    return %c0_i32, %c0_i32_0 : i32, i32
  }
  func.func @transform_6(%arg0: i32) -> (i32, i32) {
    %c0_i32 = arith.constant 0 : i32
    %c0_i32_0 = arith.constant 0 : i32
    %c0_i32_1 = arith.constant 0 : i32
    return %c0_i32, %c0_i32_0 : i32, i32
  }
  func.func @transform_7(%arg0: i32) -> (i32, i32) {
    %c0_i32 = arith.constant 0 : i32
    %c0_i32_0 = arith.constant 0 : i32
    return %arg0, %c0_i32 : i32, i32
  }
}

</mosaic_0001>

<bundles_post_ra>
// kernel: decoder_cnn_small_forward.1
= control target key start
LH: loop header
LB: loop body
LE: loop exit
PB: predicated region body
PF: predicated region fallthrough
CT: control target
= control target key end

     0   :  { %s2231_s0 = inlined_call_operand.hbm [shape: f32[16,8], index: 0, kind: input, shape index: {}]   ;;  %s2232_s1 = inlined_call_operand.hbm [shape: f32[8,32], index: 1, kind: input, shape index: {}]   ;;  %s2233_s2 = inlined_call_operand.hbm [shape: f32[32,32], index: 2, kind: input, shape index: {}]   ;;  %s2234_s3 = inlined_call_operand.hbm [shape: f32[8,32], index: 3, kind: input, shape index: {}]   ;;  %s2235_s4 = inlined_call_operand.vmem [shape: f32[33,32], index: 4, kind: input, shape index: {}]   ;;  %s2236_s5 = inlined_call_operand.hbm [shape: f32[4,32], index: 5, kind: input, shape index: {}]   ;;  %s2237_s6 = inlined_call_operand.hbm [shape: f32[33,384], index: 6, kind: input, shape index: {}]   ;;  %s2238_s7 = inlined_call_operand.vmem [shape: f32[128,384], index: 7, kind: output, shape index: {}]  }
   0x1   :  { %2243 = sst [smem:[#allocation16_spill]] %s2232_s1 }
   0x2   :  { %12 = vsyncpa [#allocation3], 0 }
   0x3   :  { %14 = vsyncpa [#allocation3 + $0x1], 0 }
   0x4   :  { %15 = vsyncpa [#allocation5], 0 }
   0x5   :  { %16 = vsyncpa [#allocation8], 0 }
   0x6   :  { %17 = vsyncpa [#allocation11], 0  ;;  %s1856_s24 = smov 0   ;;  %s1858_s25 = smov 0  }
   0x7   :  { %s1860_s26 = smov 0   ;;  %s1862_s27 = smov 0  }
   0x8 LB: > { %s1802_s28 = smov [#allocation4]   ;;  %s2242_s30 = sadd.s32 4294967295, %s1800_s27   ;;  %s1800_s27 = sphi %s1862_s27, %s2258_s27   ;;  %s1796_s26 = sphi %s1860_s26, %s2257_s26   ;;  %s1792_s25 = sphi %s1858_s25, %s2256_s25   ;;  %s1788_s24 = sphi %s1856_s24, %s2255_s24  }
   0x9   : > { %s219_s29 = sshll.u32 %s1802_s28, 4  ;;  %p1305_p0 = scmp.ge.s32.totalorder %s1800_s27, 1  ;;  %s220_s29 = int_to_ptr.vmem [resolvable:$true] %s219_s29 }
   0xa   : > { %p1880_p1 = scmp.eq.s32.totalorder %s2242_s30, 0  ;;  %p206_p2 = scmp.lt.s32.totalorder %s1800_s27, 3 }
   0xb   : > { %s1803_s10 = smov [#allocation7]   ;;  %s1804_s12 = smov [#allocation6]  }
   0xc   : > { %s2244_s8 = scalar_select %p1880_p1, 1, 0 }
   0xd   : > { %p1885_p3 = pnand %p1305_p0, %p206_p2  ;;  %s243_s11 = sshll.u32 %s1803_s10, 4  ;;  %s1891_s11 = int_to_ptr.vmem [resolvable:$true] %s243_s11 }
   0xe   : > { %s229_s13 = sshll.u32 %s1804_s12, 4  ;;  %s2247_s1 = sld [smem:[#allocation16_spill]]  ;;  %s1899_s13 = int_to_ptr.vmem [resolvable:$true] %s229_s13 }
   0xf   : > { %s2245_s9 = scalar_select %p1885_p3, 1, 0 }
  0x10   : > { %p1506_p4 = pneg %p1885_p3 }
  0x12   : > { %p1895_p5 = pnand %p1506_p4, %p1880_p1 }
  0x14   : > { %s1584_s17 = scalar_lea.hbm %s2247_s1, 128  ;;  %p1909_p7 = pneg %p1895_p5 }
  0x15   : > { %p1585_p6 = scmp.ne.s32.totalorder %s2247_s1, %s1584_s17  ;;  %p1591_p10 = scmp.lt.u32.totalorder %s1584_s17, %s2247_s1 }
  0x17   : > { %p1587_p8 = pnand %p1909_p7, %p1585_p6 }
  0x19   : > { %p1588_p9 = pneg %p1587_p8 }
  0x1b   : > { %p1593_p11 = pnand %p1591_p10, %p1588_p9 }
  0x1d   : > { %1596 = shalt.err (!%p1593_p11)
}
  0x1e   : > { %s1597_s23 = scalar_lea.vmem %s220_s29, 128  ;;  %p1605_p2 = scmp.lt.s32.totalorder %s220_s29, %s220_s29 }
  0x1f   : > { %p1598_p12 = scmp.ne.s32.totalorder %s220_s29, %s1597_s23  ;;  %p1606_p4 = scmp.lt.s32.totalorder %s1597_s23, %s1597_s23 }
  0x21   : > { %p1600_p13 = pnand %p1598_p12, %p1909_p7  ;;  %p1607_p3 = por %p1606_p4, %p1605_p2 }
  0x23   : > { %p1601_p0 = pneg %p1600_p13 }
  0x25   : > { %p1608_p1 = pnand %p1607_p3, %p1601_p0 }
  0x27   : > { %1611 = shalt.err (!%p1608_p1)
}
  0x28   : > { %1509 = dma.hbm_to_vmem [thread:$0]  (!%p1895_p5), %s2247_s1, 128, %s220_s29, [#allocation5]  }
  0x29   : > { %s1612_s16 = scalar_lea.hbm %s2234_s3, 128 }
  0x2a   : > { %p1613_p6 = scmp.ne.s32.totalorder %s2234_s3, %s1612_s16  ;;  %p1619_p1 = scmp.lt.u32.totalorder %s1612_s16, %s2234_s3 }
  0x2c   : > { %p1615_p8 = pnand %p1613_p6, %p1909_p7 }
  0x2e   : > { %p1616_p9 = pneg %p1615_p8 }
  0x30   : > { %p1621_p3 = pnand %p1619_p1, %p1616_p9 }
  0x32   : > { %1624 = shalt.err (!%p1621_p3)
}
  0x33   : > { %s1625_s29 = scalar_lea.vmem %s1891_s11, 128  ;;  %p1633_p13 = scmp.lt.s32.totalorder %s1891_s11, %s1891_s11 }
  0x34   : > { %p1626_p10 = scmp.ne.s32.totalorder %s1891_s11, %s1625_s29  ;;  %p1634_p0 = scmp.lt.s32.totalorder %s1625_s29, %s1625_s29 }
  0x36   : > { %p1628_p11 = pnand %p1626_p10, %p1909_p7  ;;  %p1635_p2 = por %p1634_p0, %p1633_p13 }
  0x38   : > { %p1629_p12 = pneg %p1628_p11 }
  0x3a   : > { %p1636_p4 = pnand %p1635_p2, %p1629_p12 }
  0x3c   : > { %1639 = shalt.err (!%p1636_p4)
}
  0x3d   : > { %1515 = dma.hbm_to_vmem [thread:$0]  (!%p1895_p5), %s2234_s3, 128, %s1891_s11, [#allocation8]  }
  0x3e   : > { %s1640_s12 = scalar_lea.hbm %s2233_s2, 512 }
  0x3f   : > { %p1641_p6 = scmp.ne.s32.totalorder %s2233_s2, %s1640_s12  ;;  %p1647_p1 = scmp.lt.u32.totalorder %s1640_s12, %s2233_s2 }
  0x41   : > { %p1643_p8 = pnand %p1641_p6, %p1909_p7 }
  0x43   : > { %p1644_p9 = pneg %p1643_p8 }
  0x45   : > { %p1649_p3 = pnand %p1647_p1, %p1644_p9 }
  0x47   : > { %1652 = shalt.err (!%p1649_p3)
}
  0x48   : > { %s1653_s11 = scalar_lea.vmem %s1899_s13, 512  ;;  %p1661_p13 = scmp.lt.s32.totalorder %s1899_s13, %s1899_s13 }
  0x49   : > { %p1654_p10 = scmp.ne.s32.totalorder %s1899_s13, %s1653_s11  ;;  %p1662_p0 = scmp.lt.s32.totalorder %s1653_s11, %s1653_s11 }
  0x4b   : > { %p1656_p11 = pnand %p1654_p10, %p1909_p7  ;;  %p1663_p2 = por %p1662_p0, %p1661_p13 }
  0x4d   : > { %p1657_p12 = pneg %p1656_p11 }
  0x4f   : > { %p1664_p4 = pnand %p1663_p2, %p1657_p12 }
  0x51   : > { %1667 = shalt.err (!%p1664_p4)
}
  0x52   : > { %s1805_s19 = smov 128   ;;  %s1806_s21 = smov 8  }
  0x53   : > { %1512 = dma.hbm_to_vmem [thread:$0]  (!%p1895_p5), %s2233_s2, 512, %s1899_s13, [#allocation5], %s1805_s19, %s1805_s19, %s1806_s21  }
  0x54   : > { %s1807_s23 = smov [#allocation9]   ;;  %s1808_s10 = smov [#allocation10]  }
  0x55   : > { %s257_s28 = sshll.u32 %s1807_s23, 4  ;;  %s267_s12 = sshll.u32 %s1808_s10, 4  ;;  %s258_s28 = int_to_ptr.vmem [resolvable:$true] %s257_s28  ;;  %s268_s12 = int_to_ptr.vmem [resolvable:$true] %s267_s12 }
  0x56   : > { %s1668_s17 = scalar_lea.hbm %s2236_s5, 64 }
  0x57   : > { %p1669_p6 = scmp.ne.s32.totalorder %s2236_s5, %s1668_s17  ;;  %p1675_p1 = scmp.lt.u32.totalorder %s1668_s17, %s2236_s5 }
  0x59   : > { %p1671_p8 = pnand %p1669_p6, %p1909_p7 }
  0x5b   : > { %p1672_p9 = pneg %p1671_p8 }
  0x5d   : > { %p1677_p3 = pnand %p1675_p1, %p1672_p9 }
  0x5f   : > { %1680 = shalt.err (!%p1677_p3)
}
  0x60   : > { %s1681_s13 = scalar_lea.vmem %s258_s28, 64  ;;  %p1689_p13 = scmp.lt.s32.totalorder %s258_s28, %s258_s28 }
  0x61   : > { %p1682_p10 = scmp.ne.s32.totalorder %s258_s28, %s1681_s13  ;;  %p1690_p0 = scmp.lt.s32.totalorder %s1681_s13, %s1681_s13 }
  0x63   : > { %p1684_p11 = pnand %p1682_p10, %p1909_p7  ;;  %p1691_p2 = por %p1690_p0, %p1689_p13 }
  0x65   : > { %p1685_p12 = pneg %p1684_p11 }
  0x67   : > { %p1692_p4 = pnand %p1691_p2, %p1685_p12 }
  0x69   : > { %1695 = shalt.err (!%p1692_p4)
}
  0x6a   : > { %1518 = dma.hbm_to_vmem [thread:$0]  (!%p1895_p5), %s2236_s5, 64, %s258_s28, [#allocation8]  }
  0x6b   : > { %s1696_s29 = scalar_lea.hbm %s2237_s6, 1920 }
  0x6c   : > { %p1697_p6 = scmp.ne.s32.totalorder %s2237_s6, %s1696_s29  ;;  %p1703_p1 = scmp.lt.u32.totalorder %s1696_s29, %s2237_s6 }
  0x6e   : > { %p1699_p8 = pnand %p1697_p6, %p1909_p7 }
  0x70   : > { %p1700_p9 = pneg %p1699_p8 }
  0x72   : > { %p1705_p3 = pnand %p1703_p1, %p1700_p9 }
  0x74   : > { %1708 = shalt.err (!%p1705_p3)
}
  0x75   : > { %s1709_s16 = scalar_lea.vmem %s268_s12, 1920  ;;  %p1717_p13 = scmp.lt.s32.totalorder %s268_s12, %s268_s12 }
  0x76   : > { %p1710_p10 = scmp.ne.s32.totalorder %s268_s12, %s1709_s16  ;;  %p1718_p0 = scmp.lt.s32.totalorder %s1709_s16, %s1709_s16 }
  0x78   : > { %p1712_p11 = pnand %p1710_p10, %p1909_p7  ;;  %p1719_p2 = por %p1718_p0, %p1717_p13 }
  0x7a   : > { %p1713_p12 = pneg %p1712_p11 }
  0x7c   : > { %p1720_p4 = pnand %p1719_p2, %p1713_p12 }
  0x7e   : > { %1723 = shalt.err (!%p1720_p4)
}
  0x7f   : > { %s1809_s28 = smov 384   ;;  %s1810_s20 = smov 24  }
  0x80   : > { %1521 = dma.hbm_to_vmem [thread:$0]  (!%p1895_p5), %s2237_s6, 1920, %s268_s12, [#allocation11], %s1809_s28, %s1809_s28, %s1810_s20  }
  0x81   : > { %s2008_s11 = sadd.s32 1, %s1800_s27   ;;  %s30_s19 = sadd.s32 1, %s1796_s26 }
  0x82   : > { %s27_s13 = ssub.s32 %s1800_s27, %s2008_s11  ;;  %p37_p6 = scmp.ne.s32.totalorder %s1796_s26, %s1792_s25 }
  0x83   : > { %p28_p7 = scmp.eq.s32.totalorder %s27_s13, 0  ;;  %p38_p8 = scmp.eq.s32.totalorder %s1800_s27, 0 }
  0x84   : > { %p43_p9 = scmp.ne.s32.totalorder %s1792_s25, %s1788_s24  ;;  %p2249_p3 = scmp.ne.s32.totalorder %s2244_s8, 0 }
  0x85   : > { %s2019_s21 = scalar_select %p28_p7, %s1796_s26, %s30_s19  }
  0x86   : > { %p39_p1 = por %p38_p8, %p37_p6  ;;  %p2023_p10 = por %p2249_p3, %p43_p9 }
  0x87   : > { %p1531_p11 = scmp.lt.s32.totalorder %s1800_s27, 2  ;;  %s281_s14 = sand.u32 1, %s1796_s26  }
  0x88   : > { %s1312_s12 = sshll.u32 %s281_s14, 3  ;;  %s1313_s30 = sshll.u32 %s1800_s27, 7 }
  0x89   : > { %s2033_s23 = scalar_lea.hbm %s2231_s0, %s1313_s30  ;;  %s285_s24 = scalar_lea.vmem [#allocation2], %s1312_s12 }
  0x8a   : > { %s292_s10 = sshll.u32 %s285_s24, 4  ;;  %p2037_p5 = pnand %p1531_p11, %p39_p1  ;;  %s2035_s10 = int_to_ptr.vmem [resolvable:$true] %s292_s10 }
  0x8b   : > { %s282_s16 = scalar_lea.sflag [#allocation3], %s281_s14  ;;  %s1724_s28 = scalar_lea.hbm %s2033_s23, 128 }
  0x8c   : > { %p1725_p12 = scmp.ne.s32.totalorder %s2033_s23, %s1724_s28  ;;  %p1726_p13 = pneg %p2037_p5 }
  0x8d   : > { %s1729_s18 = scalar_lea.hbm %s2231_s0, 256  ;;  %p1730_p4 = scmp.lt.u32.totalorder %s2033_s23, %s2231_s0 }
  0x8e   : > { %p1727_p0 = pnand %p1726_p13, %p1725_p12  ;;  %p1731_p7 = scmp.lt.u32.totalorder %s1729_s18, %s1724_s28 }
  0x8f   : > { %p1733_p8 = scmp.lt.u32.totalorder %s1724_s28, %s2033_s23 }
  0x90   : > { %p1728_p2 = pneg %p1727_p0  ;;  %p1732_p6 = por %p1731_p7, %p1730_p4 }
  0x92   : > { %p1734_p9 = por %p1733_p8, %p1732_p6 }
  0x94   : > { %p1735_p1 = pnand %p1734_p9, %p1728_p2 }
  0x96   : > { %1738 = shalt.err (!%p1735_p1)
}
  0x97   : > { %s1739_s14 = scalar_lea.vmem %s2035_s10, 128  ;;  %s1811_s12 = smov [#allocation2]  }
  0x98   : > { %p1740_p3 = scmp.ne.s32.totalorder %s2035_s10, %s1739_s14  ;;  %s1744_s30 = sshll.u32 %s1811_s12, 4  ;;  %s1745_s30 = int_to_ptr.vmem [resolvable:$false] %s1744_s30 }
  0x99   : > { %s1746_s29 = scalar_lea.vmem %s1745_s30, 256  ;;  %p1747_p0 = scmp.lt.s32.totalorder %s2035_s10, %s1745_s30 }
  0x9a   : > { %p1742_p11 = pnand %p1740_p3, %p1726_p13  ;;  %p1748_p4 = scmp.lt.s32.totalorder %s1746_s29, %s1739_s14 }
  0x9c   : > { %p1743_p12 = pneg %p1742_p11  ;;  %p1749_p7 = por %p1748_p4, %p1747_p0 }
  0x9e   : > { %p1750_p6 = pnand %p1749_p7, %p1743_p12 }
  0xa0   : > { %1753 = shalt.err (!%p1750_p6)
}
  0xa1   : > { %1525 = dma.hbm_to_vmem [thread:$0]  (!%p2037_p5), %s2033_s23, 128, %s2035_s10, %s282_s16  }
  0xa2   : > { %p2252_p2 = scmp.ne.s32.totalorder %s2245_s9, 0 }
  0xa3   : > { %s303_s22 = sand.u32 (!%p2252_p2), 1, %s1792_s25  }
  0xa4   : > { %301 = sbr.rel (%p2252_p2) target bundleno = 1834 (0x72a), region = 48  ;;  %s1315_s24 = sshll.u32 (!%p2252_p2), %s303_s22, 3 }
  0xa5   : > { %s304_s28 = scalar_lea.sflag (!%p2252_p2), [#allocation3], %s303_s22  ;;  %s307_s20 = scalar_lea.vmem (!%p2252_p2), [#allocation2], %s1315_s24 }
  0xab   : > { %1771 = dma.done.wait (%p2023_p10), %s304_s28, 128  }
  0xac   : > { %1773 = vsyncadd (%p2023_p10), %s304_s28, 4294967168  ;;  %p2253_p13 = scmp.ne.s32.totalorder %s2244_s8, 0 }
  0xae   : > { %1775 = dma.done.wait (%p2253_p13), [#allocation5], 640  }
  0xaf   : > { %1777 = vsyncadd (%p2253_p13), [#allocation5], 4294966656 }
  0xb0   : > { %1779 = dma.done.wait (%p2253_p13), [#allocation8], 192  }
  0xb1   : > { %1781 = vsyncadd (%p2253_p13), [#allocation8], 4294967104 }
  0xb2   : > { %1783 = dma.done.wait (%p2253_p13), [#allocation11], 1920  }
  0xb3   : > { %1785 = vsyncadd (%p2253_p13), [#allocation11], 4294965376  ;;  %v1812_v0 = vmov 0.0   ;;  %vm1813_vm0 = vmmov 0   ;;  %vm373_vm1 = vcmask 64512   ;;  %v368_v1 = vld [vmem:[#allocation4] sm:$0xff]  ;;  %v369_v10 = vlaneseq }
  0xb4   : > { %1392 = vmatprep.subr.mxu0 %v1812_v0  ;;  %1394 = vmatprep.mubr.msk.f32.mxu0 %vm1813_vm0, %v1812_v0  ;;  %v367_v2 = vld [vmem:[%s307_s20] sm:$0xff]  ;;  %v448_v3 = vld [vmem:[#allocation6] sm:$0xff]  ;;  %v1814_v5 = vmov 0.0|0.0   ;;  %v451_v8 = vld [vmem:[#allocation6 + $0x18] sm:$0xff]  ;;  %vm456_vm2 = vcmask 261120   ;;  %vm683_vm3 = vcmask 1043456  }
  0xb5   : > { %1393 = vmatpush3.msra.mxu0 %v368_v1  ;;  %v449_v4 = vld [vmem:[#allocation6 + $0x8] sm:$0xff]  ;;  %v450_v7 = vld [vmem:[#allocation6 + $0x10] sm:$0xff]  ;;  %v2090_v11 = vshrl.u32 %v369_v10, 7  ;;  %v2093_v13 = vld [vmem:[#allocation7] sm:$0xff]  ;;  %vm670_vm4 = vcmask 31744   ;;  %s1815_s19 = smov 124  }
  0xb6   : > { %1395 = vmatmul.mubr.msk.f32.vlgmr.msra.gmra.mrb[0].mxu0 %vm373_vm1, %v367_v2  ;;  %1455 = vmatprep.subr.bf16.mxu0 %v1814_v5  ;;  %v1456_v6 = vpack.c.bf16 %v449_v4, %v448_v3  ;;  %v1459_v9 = vpack.c.bf16 %v451_v8, %v450_v7  ;;  %v555_v30 = vld [vmem:[%s2235_s4] sm:$0xff]  ;;  %v556_v31 = vld [vmem:[%s2235_s4 + $0x8] sm:$0xff]  ;;  %v557_v33 = vld [vmem:[%s2235_s4 + $0x10] sm:$0xff]  ;;  %s2254_s14 = sadd.s32 4294967295, %s1800_s27  }
  0xb7   : > { %1405 = vmatprep.mubr.msk.f32.mxu0 %vm1813_vm0, %v1812_v0  ;;  %v371_v12 = vsub.s32 0, %v2090_v11  ;;  %v454_v19 = vsub.s32 1, %v2090_v11  ;;  %v1462_v32 = vpack.c.bf16 %v556_v31, %v555_v30  ;;  %v558_v34 = vld [vmem:[%s2235_s4 + $0x18] sm:$0xff]  ;;  %v546_v39 = vsub.s32 2, %v2090_v11  ;;  %v1325_v48 = vld [vmem:[%s2235_s4 + $0x20] ss:$0 sm:$0xff] }
  0xb8   : > { %1457 = vmatpush3.bf16.msra.mxu0 %v1456_v6  ;;  %v1465_v35 = vpack.c.bf16 %v558_v34, %v557_v33  ;;  %v551_v40 = vsub.s32 3, %v2090_v11  ;;  %v669_v52 = vld [vmem:[#allocation9] sm:$0xf]  ;;  %v894_v54 = vld [vmem:[#allocation10 + $0x8] sm:$0xff]  ;;  %v897_v55 = vld [vmem:[#allocation10 + $0x20] sm:$0xff]  ;;  %s1321_s12 = sshll.u32 %s2254_s14, 3 }
  0xb9   : > { %1458 = vmatprep.subr.bf16.mxu0 %v1814_v5  ;;  %v372_v14 = vrot.slane %v2093_v13, %v371_v12  ;;  %v455_v20 = vrot.slane %v2093_v13, %v454_v19  ;;  %v547_v41 = vrot.slane %v2093_v13, %v546_v39  ;;  %1419 = vmatprep.subr.msk.mxu1 %vm683_vm3, %v669_v52  ;;  %v893_v56 = vld [vmem:[#allocation10] sm:$0xff]  ;;  %v896_v58 = vld [vmem:[#allocation10 + $0x18] sm:$0xff]  ;;  %v895_v59 = vld [vmem:[#allocation10 + $0x10] sm:$0xff]  ;;  %p360_p10 = scmp.lt.s32.totalorder %s1321_s12, 15 }
  0xba   : > { %v552_v44 = vrot.slane %v2093_v13, %v551_v40  ;;  %1420 = vmatpush3.msk.msra.mxu1 %vm683_vm3, %v669_v52  ;;  %v1467_v57 = vpack.c.bf16 %v897_v55, %v894_v54  ;;  %v898_v60 = vld [vmem:[#allocation10 + $0x28] sm:$0xff]  ;;  %v1469_v61 = vpack.c.bf16 %v896_v58, %v893_v56  ;;  %v900_v3 = vld [vmem:[#allocation10 + $0x38] sm:$0xff]  ;;  %v903_v4 = vld [vmem:[#allocation10 + $0x50] sm:$0xff] }
  0xbb   : > { %v1475_v62 = vpack.c.bf16 %v898_v60, %v895_v59  ;;  %v899_v6 = vld [vmem:[#allocation10 + $0x30] sm:$0xff]  ;;  %v902_v7 = vld [vmem:[#allocation10 + $0x48] sm:$0xff]  ;;  %v901_v10 = vld [vmem:[#allocation10 + $0x40] sm:$0xff]  ;;  %s2260_s12 = smov (!%p360_p10, %s1321_s12), 15 }
  0xbc   : > { %1460 = vmatpush3.bf16.msra.mxu0 %v1459_v9  ;;  %1468 = vmatprep.subr.bf16.mxu1 %v1467_v57  ;;  %v1473_v8 = vpack.c.bf16 %v902_v7, %v899_v6  ;;  %v904_v12 = vld [vmem:[#allocation10 + $0x58] sm:$0xff]  ;;  %s1483_s30 = smul.u32 24, %s2260_s12 }
  0xbd   : > { %1461 = vmatprep.subr.bf16.mxu0 %v1814_v5 }
  0xbe   : > { %s2168_s24 = scalar_lea.vmem %s2238_s7, %s1483_s30 }
 0x189   : > { %v443_v15 = vpop.f32.mrb[0].mxu0 }
 0x18a   : > { %v444_v16 = vadd.f32 %v443_v15, %v372_v14  ;;  %v1396_v17 = vpop.f32.mrb[1].mxu0  ;;  %v1479_v14 = vpack.c.bf16 %v904_v12, %v901_v10 }
 0x18c   : > { %v447_v18 = vmax.f32 %v444_v16, 0.0 }
 0x18e   : > { %1406 = vmatmul.mubr.msk.f32.vlgmr.msra.gmra.mrb[2].mxu0 %vm456_vm2, %v447_v18  ;;  %v875_v18 = vsub.s32 4, %v2090_v11 }
 0x18f   : > { %1416 = vmatprep.mubr.msk.f32.mxu0 %vm1813_vm0, %v1812_v0  ;;  %1463 = vmatpush3.bf16.msra.mxu0 %v1462_v32 }
 0x190   : > { %1464 = vmatprep.subr.bf16.mxu0 %v1814_v5  ;;  %v1471_v5 = vpack.c.bf16 %v903_v4, %v900_v3  ;;  %v876_v19 = vrot.slane %v2093_v13, %v875_v18 }
 0x193   : > { %1466 = vmatpush3.bf16.msra.mxu0 %v1465_v35 }
 0x194   : > { %1427 = vmatprep.subr.msk.mxu0 %vm683_vm3, %v669_v52 }
 0x261   : > { %v526_v21 = vpop.f32.mrb[2].mxu0 }
 0x262   : > { %v527_v22 = vadd.f32 %v526_v21, %v455_v20  ;;  %v1407_v23 = vpop.f32.mrb[3].mxu0 }
 0x264   : > { %v530_v24 = vsel %vm456_vm2, %v527_v22, 0.0 }
 0x265   : > { %531 = vadd.xlane.f32.xlu0 %v530_v24 }
 0x2f2   : > { %v532_v25 = vpop.xlane.xlu0 %531 }
 0x2f3   : > { %v534_v26 = vmul.f32 0.03125, %v532_v25 }
 0x2f5   : > { %v535_v27 = vsub.f32 %v527_v22, %v534_v26 }
 0x2f7   : > { %v536_v28 = vmul.f32 %v535_v27, %v535_v27 }
 0x2f9   : > { %v537_v29 = vsel %vm456_vm2, %v536_v28, 0.0 }
 0x2fa   : > { %538 = vadd.xlane.f32.xlu0 %v537_v29 }
 0x387   : > { %v539_v36 = vpop.xlane.xlu0 %538 }
 0x388   : > { %v540_v37 = vmul.f32 0.03125, %v539_v36 }
 0x38a   : > { %v541_v38 = vadd.f32 1e-05, %v540_v37 }
 0x38c   : > { %1582 = vrsqrt.f32 %v541_v38 }
 0x396   : > { %v1583_v42 = vpop.eup %1582 }
 0x397   : > { %v543_v43 = vmul.f32 %v1583_v42, %v535_v27  ;;  %v2159_v42 = vld [vmem:[#allocation10 + $0x60] ss:$0 sm:$0xff] }
 0x399   : > { %v548_v45 = vmul.f32 %v547_v41, %v543_v43  ;;  %v2161_v43 = vld [vmem:[#allocation10 + $0x68] ss:$0 sm:$0xff] }
 0x39b   : > { %v553_v46 = vadd.f32 %v552_v44, %v548_v45  ;;  %v2163_v44 = vld [vmem:[#allocation10 + $0x70] ss:$0 sm:$0xff] }
 0x39d   : > { %v554_v47 = vmax.f32 %v553_v46, 0.0 }
 0x39f   : > { %1417 = vmatmul.mubr.msk.f32.vlgmr.msra.gmra.mrb[4].mxu0 %vm456_vm2, %v554_v47 }
 0x3a0   : > { %1428 = vmatpush3.msk.msra.mxu0 %vm683_vm3, %v669_v52 }
 0x3a1   : > { %1476 = vmatprep.subr.bf16.mxu0 %v1475_v62 }
 0x472   : > { %v633_v49 = vpop.f32.mrb[4].mxu0 }
 0x473   : > { %v1418_v50 = vpop.f32.mrb[5].mxu0  ;;  %v634_v51 = vadd.f32 %v1325_v48, %v633_v49 }
 0x475   : > { %637 = vxpose.xlu1.b32.start.end [1/1] (short) (narrow) %v634_v51, 32 }
 0x4f5   : > { %v653_v53 = vpop.trf.xlu1 }
 0x4f6   : > { %1421 = vmatprep.mubr.msk.f32.mxu1 %vm670_vm4, %v653_v53  ;;  %772 = vrot.lane.b32.xlu1 %v653_v53, %s1815_s19 }
 0x4f9   : > { %v654_v63 = vpop.trf.xlu1 }
 0x4fa   : > { %1422 = vmatmul.mubr.msk.f32.vlgmr.msra.gmra.mrb[0].mxu1 %vm670_vm4, %v654_v63  ;;  %774 = vrot.lane.b32.xlu0 %v654_v63, %s1815_s19 }
 0x4fb   : > { %1470 = vmatpush1.bf16.msra.mxu1 %v1469_v61 }
 0x4fc   : > { %1472 = vmatprep.subr.bf16.mxu1 %v1471_v5 }
 0x4fd   : > { %v655_v1 = vpop.trf.xlu1 }
 0x4fe   : > { %1424 = vmatprep.mubr.msk.f32.mxu1 %vm670_vm4, %v655_v1  ;;  %776 = vrot.lane.b32.xlu0 %v655_v1, %s1815_s19 }
 0x4ff   : > { %1474 = vmatpush1.bf16.msra.mxu1 %v1473_v8 }
 0x501   : > { %v656_v2 = vpop.trf.xlu1 }
 0x502   : > { %1425 = vmatmul.mubr.msk.f32.gmra.mrb[2].mxu1 %vm670_vm4, %v656_v2  ;;  %778 = vrot.lane.b32.xlu0 %v656_v2, %s1815_s19 }
 0x503   : > { %1008 = vmatprep.mubr.f32.mxu1 %v1812_v0 }
 0x568   : > { %v773_v9 = vpop.permute.xlu1 %772 }
 0x569   : > { %1429 = vmatprep.mubr.msk.f32.mxu0 %vm670_vm4, %v773_v9 }
 0x56c   : > { %v775_v15 = vpop.permute.xlu0 %774 }
 0x56d   : > { %1430 = vmatmul.mubr.msk.f32.vlgmr.msra.gmra.mrb[6].mxu0 %vm670_vm4, %v775_v15 }
 0x56e   : > { %1478 = vmatpush3.bf16.msra.mxu0 %v1475_v62 }
 0x56f   : > { %1480 = vmatprep.subr.bf16.mxu0 %v1479_v14 }
 0x570   : > { %v777_v16 = vpop.permute.xlu0 %776 }
 0x571   : > { %1432 = vmatprep.mubr.msk.f32.mxu0 %vm670_vm4, %v777_v16 }
 0x572   : > { %1482 = vmatpush3.bf16.msra.mxu0 %v1479_v14 }
 0x574   : > { %v779_v17 = vpop.permute.xlu0 %778 }
 0x575   : > { %1433 = vmatmul.mubr.msk.f32.gmra.mrb[8].mxu0 %vm670_vm4, %v779_v17 }
 0x5cd   : > { %v1423_v20 = vpop.f32.mrb[0].mxu1 }
 0x5ce   : > { %v878_v21 = vadd.f32 %v1423_v20, %v876_v19  ;;  %v753_v22 = vpop.f32.mrb[1].mxu1 }
 0x5cf   : > { %v877_v23 = vadd.f32 %v876_v19, %v753_v22 }
 0x5d0   : > { %v886_v25 = vmax.f32 %v878_v21, 0.0 }
 0x5d1   : > { %v885_v24 = vmax.f32 %v877_v23, 0.0 }
 0x5d3   : > { %1340 = vmatmul.mubr.msk.f32.vlgmr.msra.gmra.mrb[4].mxu1 %vm456_vm2, %v885_v24  ;;  %1443 = vmatprep.mubr.msk.f32.mxu0 %vm456_vm2, %v885_v24 }
 0x5d4   : > { %1444 = vmatmul.mubr.msk.f32.vlgmr.msra.gmra.mrb[10].mxu0 %vm456_vm2, %v886_v25  ;;  %1014 = vmatprep.mubr.f32.mxu1 %v1812_v0 }
 0x5d5   : > { %v1426_v26 = vpop.f32.mrb[2].mxu1 }
 0x5d6   : > { %v880_v27 = vadd.f32 %v1426_v26, %v876_v19  ;;  %v763_v28 = vpop.f32.mrb[3].mxu1 }
 0x5d7   : > { %v879_v11 = vadd.f32 %v876_v19, %v763_v28  ;;  %1341 = vmatmul.mubr.msk.f32.gmra.mrb[6].mxu1 %vm456_vm2, %v886_v25 }
 0x5d8   : > { %1020 = vmatprep.mubr.f32.mxu1 %v1812_v0  ;;  %v888_v29 = vmax.f32 %v880_v27, 0.0 }
 0x5d9   : > { %v887_v13 = vmax.f32 %v879_v11, 0.0 }
 0x5db   : > { %1342 = vmatmul.mubr.msk.f32.gmra.mrb[8].mxu1 %vm456_vm2, %v887_v13  ;;  %1446 = vmatprep.mubr.msk.f32.mxu0 %vm456_vm2, %v887_v13 }
 0x5dc   : > { %1447 = vmatmul.mubr.msk.f32.gmra.mrb[12].mxu0 %vm456_vm2, %v888_v29  ;;  %1026 = vmatprep.mubr.f32.mxu1 %v1812_v0 }
 0x5df   : > { %1343 = vmatmul.mubr.msk.f32.gmra.mrb[10].mxu1 %vm456_vm2, %v888_v29 }
 0x5e0   : > { %1032 = vmatprep.mubr.f32.mxu1 %v1812_v0 }
 0x640   : > { %v1431_v30 = vpop.f32.mrb[6].mxu0 }
 0x641   : > { %v882_v31 = vadd.f32 %v1431_v30, %v876_v19  ;;  %v854_v32 = vpop.f32.mrb[7].mxu0 }
 0x642   : > { %v881_v33 = vadd.f32 %v876_v19, %v854_v32 }
 0x643   : > { %v890_v35 = vmax.f32 %v882_v31, 0.0 }
 0x644   : > { %v889_v34 = vmax.f32 %v881_v33, 0.0 }
 0x646   : > { %1344 = vmatmul.mubr.msk.f32.gmra.mrb[12].mxu1 %vm456_vm2, %v889_v34  ;;  %1449 = vmatprep.mubr.msk.f32.mxu0 %vm456_vm2, %v889_v34 }
 0x647   : > { %1450 = vmatmul.mubr.msk.f32.gmra.mrb[14].mxu0 %vm456_vm2, %v890_v35  ;;  %1038 = vmatprep.mubr.f32.mxu1 %v1812_v0 }
 0x648   : > { %v1434_v36 = vpop.f32.mrb[8].mxu0 }
 0x649   : > { %v884_v37 = vadd.f32 %v1434_v36, %v876_v19  ;;  %v864_v38 = vpop.f32.mrb[9].mxu0 }
 0x64a   : > { %v883_v39 = vadd.f32 %v876_v19, %v864_v38  ;;  %1345 = vmatmul.mubr.msk.f32.gmra.mrb[14].mxu1 %vm456_vm2, %v890_v35 }
 0x64b   : > { %1044 = vmatprep.mubr.f32.mxu1 %v1812_v0  ;;  %v892_v41 = vmax.f32 %v884_v37, 0.0 }
 0x64c   : > { %v891_v40 = vmax.f32 %v883_v39, 0.0 }
 0x64e   : > { %1346 = vmatmul.mubr.msk.f32.gmra.mrb[16].mxu1 %vm456_vm2, %v891_v40  ;;  %1452 = vmatprep.mubr.msk.f32.mxu0 %vm456_vm2, %v891_v40 }
 0x64f   : > { %1453 = vmatmul.mubr.msk.f32.gmra.mrb[16].mxu0 %vm456_vm2, %v892_v41  ;;  %1050 = vmatprep.mubr.f32.mxu1 %v1812_v0 }
 0x652   : > { %1347 = vmatmul.mubr.msk.f32.gmra.mrb[18].mxu1 %vm456_vm2, %v892_v41 }
 0x6a6   : > { %v1010_v0 = vpop.f32.mrb[4].mxu1 }
 0x6a7   : > { %v1011_v45 = vadd.f32 %v2159_v42, %v1010_v0  ;;  %v1012_v46 = vpop.f32.mrb[5].mxu1  ;;  %v1445_v47 = vpop.f32.mrb[10].mxu0 }
 0x6a8   : > { %v1013_v48 = vadd.f32 %v2161_v43, %v1012_v46  ;;  %v1129_v49 = vadd.f32 %v1445_v47, %v2163_v44  ;;  %v1123_v50 = vpop.f32.mrb[11].mxu0 }
 0x6a9   : > { %1162 = vst [vmem:[%s2168_s24] sm:$0xff] %v1011_v45  ;;  %v1124_v51 = vadd.f32 %v2163_v44, %v1123_v50 }
 0x6aa   : > { %1163 = vst [vmem:[%s2168_s24 + $0x8] sm:$0xff] %v1013_v48  ;;  %1167 = vst [vmem:[%s2168_s24 + $0x28] sm:$0xff] %v1129_v49  ;;  %v1016_v52 = vpop.f32.mrb[6].mxu1 }
 0x6ab   : > { %1164 = vst [vmem:[%s2168_s24 + $0x10] sm:$0xff] %v1124_v51  ;;  %v1017_v53 = vadd.f32 %v2159_v42, %v1016_v52  ;;  %v1018_v54 = vpop.f32.mrb[7].mxu1 }
 0x6ac   : > { %v1019_v55 = vadd.f32 %v2161_v43, %v1018_v54 }
 0x6ad   : > { %1165 = vst [vmem:[%s2168_s24 + $0x18] sm:$0xff] %v1017_v53 }
 0x6ae   : > { %1166 = vst [vmem:[%s2168_s24 + $0x20] sm:$0xff] %v1019_v55  ;;  %v1022_v56 = vpop.f32.mrb[8].mxu1 }
 0x6af   : > { %v1023_v57 = vadd.f32 %v2159_v42, %v1022_v56  ;;  %v1024_v58 = vpop.f32.mrb[9].mxu1  ;;  %v1448_v59 = vpop.f32.mrb[12].mxu0 }
 0x6b0   : > { %v1025_v60 = vadd.f32 %v2161_v43, %v1024_v58  ;;  %v1139_v61 = vadd.f32 %v1448_v59, %v2163_v44  ;;  %v1133_v62 = vpop.f32.mrb[13].mxu0 }
 0x6b1   : > { %1168 = vst [vmem:[%s2168_s24 + $0x30] sm:$0xff] %v1023_v57  ;;  %v1134_v63 = vadd.f32 %v2163_v44, %v1133_v62 }
 0x6b2   : > { %1169 = vst [vmem:[%s2168_s24 + $0x38] sm:$0xff] %v1025_v60  ;;  %1173 = vst [vmem:[%s2168_s24 + $0x58] sm:$0xff] %v1139_v61  ;;  %v1028_v1 = vpop.f32.mrb[10].mxu1 }
 0x6b3   : > { %1170 = vst [vmem:[%s2168_s24 + $0x40] sm:$0xff] %v1134_v63  ;;  %v1029_v2 = vadd.f32 %v2159_v42, %v1028_v1  ;;  %v1030_v3 = vpop.f32.mrb[11].mxu1 }
 0x6b4   : > { %v1031_v4 = vadd.f32 %v2161_v43, %v1030_v3 }
 0x6b5   : > { %1171 = vst [vmem:[%s2168_s24 + $0x48] sm:$0xff] %v1029_v2 }
 0x6b6   : > { %1172 = vst [vmem:[%s2168_s24 + $0x50] sm:$0xff] %v1031_v4 }
 0x719   : > { %v1034_v5 = vpop.f32.mrb[12].mxu1 }
 0x71a   : > { %v1035_v6 = vadd.f32 %v2159_v42, %v1034_v5  ;;  %v1036_v7 = vpop.f32.mrb[13].mxu1  ;;  %v1451_v8 = vpop.f32.mrb[14].mxu0 }
 0x71b   : > { %v1037_v9 = vadd.f32 %v2161_v43, %v1036_v7  ;;  %v1149_v10 = vadd.f32 %v1451_v8, %v2163_v44  ;;  %v1143_v12 = vpop.f32.mrb[15].mxu0 }
 0x71c   : > { %1174 = vst [vmem:[%s2168_s24 + $0x60] sm:$0xff] %v1035_v6  ;;  %v1144_v14 = vadd.f32 %v2163_v44, %v1143_v12 }
 0x71d   : > { %1175 = vst [vmem:[%s2168_s24 + $0x68] sm:$0xff] %v1037_v9  ;;  %1179 = vst [vmem:[%s2168_s24 + $0x88] sm:$0xff] %v1149_v10  ;;  %v1040_v15 = vpop.f32.mrb[14].mxu1 }
 0x71e   : > { %1176 = vst [vmem:[%s2168_s24 + $0x70] sm:$0xff] %v1144_v14  ;;  %v1041_v16 = vadd.f32 %v2159_v42, %v1040_v15  ;;  %v1042_v17 = vpop.f32.mrb[15].mxu1 }
 0x71f   : > { %v1043_v18 = vadd.f32 %v2161_v43, %v1042_v17 }
 0x720   : > { %1177 = vst [vmem:[%s2168_s24 + $0x78] sm:$0xff] %v1041_v16 }
 0x721   : > { %1178 = vst [vmem:[%s2168_s24 + $0x80] sm:$0xff] %v1043_v18  ;;  %v1046_v19 = vpop.f32.mrb[16].mxu1 }
 0x722   : > { %v1047_v20 = vadd.f32 %v2159_v42, %v1046_v19  ;;  %v1048_v21 = vpop.f32.mrb[17].mxu1  ;;  %v1454_v22 = vpop.f32.mrb[16].mxu0 }
 0x723   : > { %v1049_v23 = vadd.f32 %v2161_v43, %v1048_v21  ;;  %v1159_v24 = vadd.f32 %v1454_v22, %v2163_v44  ;;  %v1153_v25 = vpop.f32.mrb[17].mxu0 }
 0x724   : > { %1180 = vst [vmem:[%s2168_s24 + $0x90] sm:$0xff] %v1047_v20  ;;  %v1154_v26 = vadd.f32 %v2163_v44, %v1153_v25 }
 0x725   : > { %1181 = vst [vmem:[%s2168_s24 + $0x98] sm:$0xff] %v1049_v23  ;;  %1185 = vst [vmem:[%s2168_s24 + $0xb8] sm:$0xff] %v1159_v24  ;;  %v1052_v27 = vpop.f32.mrb[18].mxu1 }
 0x726   : > { %1182 = vst [vmem:[%s2168_s24 + $0xa0] sm:$0xff] %v1154_v26  ;;  %v1053_v28 = vadd.f32 %v2159_v42, %v1052_v27  ;;  %v1054_v11 = vpop.f32.mrb[19].mxu1 }
 0x727   : > { %v1055_v13 = vadd.f32 %v2161_v43, %v1054_v11 }
 0x728   : > { %1183 = vst [vmem:[%s2168_s24 + $0xa8] sm:$0xff] %v1053_v28 }
 0x729   : > { %1184 = vst [vmem:[%s2168_s24 + $0xb0] sm:$0xff] %v1055_v13 }
 0x72a PF: > { %p20_p5 = scmp.ge.s32.totalorder %s2008_s11, 4   ;;  %s2255_s24 = smov %s1792_s25 }
 0x72b   : > { %s2256_s25 = smov %s1796_s26  ;;  %s2257_s26 = smov %s2019_s21 }
 0x72c   : > { %s2258_s27 = smov %s2008_s11  ;;  %22 = sbr.rel (!%p20_p5) target bundleno = 8 (0x8), region = 108 }
 0x733   :  { %1210 = vsyncpa [#allocation3], 1 }
 0x734   :  { %1212 = vsyncpa [#allocation3 + $0x1], 1 }
 0x735   :  { %1213 = vsyncpa [#allocation5], 1 }
 0x736   :  { %1214 = vsyncpa [#allocation8], 1 }
 0x737   :  { %1215 = vsyncpa [#allocation11], 1 }

</bundles_post_ra>
